<compile_context>
chip_gen: v7x
topology: tpu7x:2x2x1
jax: 0.10.0
libtpu: 0.0.40
codegen_flags: <defaults>
</compile_context>

<pallas_src>
import jax
import jax.numpy as jnp
from jax.experimental import pallas as pl
from jax.experimental.pallas import tpu as pltpu


# --------------------------------------------------------------------------
# Structural fast path: one HBM -> HBM DMA, no VMEM streaming.
# --------------------------------------------------------------------------
def _dma_copy_kernel(x_hbm_ref, o_hbm_ref, sem):
    copy = pltpu.make_async_copy(x_hbm_ref, o_hbm_ref, sem)
    copy.start()
    copy.wait()


def _pallas_identity_copy_dma(x):
    """Materialize a fresh copy of `x` with a single HBM->HBM async copy."""
    if x.size == 0 or x.ndim == 0:
        return x  # nothing worth launching a kernel for
    return pl.pallas_call(
        _dma_copy_kernel,
        out_shape=jax.ShapeDtypeStruct(x.shape, x.dtype),
        in_specs=[pl.BlockSpec(memory_space=pl.ANY)],
        out_specs=pl.BlockSpec(memory_space=pl.ANY),
        scratch_shapes=[pltpu.SemaphoreType.DMA],
    )(x)


# --------------------------------------------------------------------------
# Alternative: lane-dense VMEM-tiled copy (kept for demonstration / cases
# where the copy is fused with other in-VMEM work).
# --------------------------------------------------------------------------
def _identity_copy_kernel(x_ref, o_ref):
    o_ref[...] = x_ref[...]


def _sublane_multiple(dtype):
    # Native sublane tile rows: 8 for 32-bit, 16 for bf16, 32 for int8/fp8.
    itemsize = jnp.dtype(dtype).itemsize
    return max(8, 32 // itemsize)


def _pallas_identity_copy_vmem(x, target_block_bytes=4 * 1024 * 1024):
    shape, dtype = x.shape, x.dtype
    total = x.size
    if total == 0 or x.ndim == 0:
        return x

    itemsize = jnp.dtype(dtype).itemsize
    sub = _sublane_multiple(dtype)

    # Widest lane-dense row width L (multiple of 128) that divides the element
    # count, leaves at least `sub` rows, and keeps a sub-row block affordable.
    L = None
    for cand in (8192, 4096, 2048, 1024, 512, 256, 128):
        if (total % cand == 0
                and (total // cand) >= sub
                and sub * cand * itemsize <= target_block_bytes):
            L = cand
            break
    if L is None:
        # Awkward shape (large prime trailing dim, too few rows, ...):
        # lane-sparse masked stores or oversized blocks would hurt — use the
        # structural HBM->HBM DMA copy instead.
        return _pallas_identity_copy_dma(x)

    rows = total // L
    x2 = x.reshape(rows, L)

    # Row tile sized by bytes, rounded to the dtype-native sublane multiple.
    max_rows = max(sub, (target_block_bytes // (L * itemsize)) // sub * sub)
    tile_rows = min(rows, max_rows)

    # Force >= 2 grid steps for mid/large arrays so both v7x TensorCores get a
    # share of the copy ("parallel" grid axis -> megacore split).
    array_bytes = total * itemsize
    if rows > tile_rows or (rows >= 2 * sub and array_bytes >= 2 * 1024 * 1024):
        half = max(sub, ((rows // 2) // sub) * sub)
        tile_rows = min(tile_rows, half)

    grid = (pl.cdiv(rows, tile_rows),)  # Pallas masks the partial last block

    out2 = pl.pallas_call(
        _identity_copy_kernel,
        out_shape=jax.ShapeDtypeStruct((rows, L), dtype),
        grid=grid,
        in_specs=[pl.BlockSpec((tile_rows, L), lambda i: (i, 0))],
        out_specs=pl.BlockSpec((tile_rows, L), lambda i: (i, 0)),
        compiler_params=pltpu.CompilerParams(
            dimension_semantics=("parallel",),
            vmem_limit_bytes=32 * 1024 * 1024,
        ),
    )(x2)

    return out2.reshape(shape)


# --------------------------------------------------------------------------
# Public wrapper mirroring NoTransform.forward.
# --------------------------------------------------------------------------
def no_transform(x, return_type="unchanged", materialize=False, method="dma"):
    """Pallas/JAX implementation of NoTransform.forward.

    The PyTorch module simply returns its input, so the default path does no
    device work at all.  Set `materialize=True` to force a fresh output buffer
    (method="dma": single HBM->HBM DMA; method="vmem": lane-dense tiled copy).
    """
    # 'pil' / 'tensor' conversions are host-only; identity semantics on-device.
    if not materialize:
        return x
    if method == "vmem":
        return _pallas_identity_copy_vmem(x)
    return _pallas_identity_copy_dma(x)


if __name__ == "__main__":
    key = jax.random.PRNGKey(0)
    # Small NCHW input consistent with an image-transform module.
    x = jax.random.normal(key, (2, 4, 16, 16), dtype=jnp.float32)

    # Default module semantics: identity, no kernel launch, no copy.
    y_fast = no_transform(x, return_type="unchanged")
    assert y_fast is x

    # Materialized copy via the structural HBM->HBM DMA path.
    y_dma = jax.block_until_ready(no_transform(x, materialize=True, method="dma"))
    assert y_dma.shape == x.shape and y_dma.dtype == x.dtype
    assert bool(jnp.all(y_dma == x))

    # Materialized copy via the lane-dense VMEM-tiled path.
    y_vmem = jax.block_until_ready(no_transform(x, materialize=True, method="vmem"))
    assert y_vmem.shape == x.shape and y_vmem.dtype == x.dtype
    assert bool(jnp.all(y_vmem == x))

    print("KERNEL_OK")
</pallas_src>

<mosaic_0001>
module attributes {stable_mosaic.version = 11 : i64} {
  func.func @_dma_copy_kernel(%arg0: memref<2x4x16x16xf32, #tpu.memory_space<any>>, %arg1: memref<2x4x16x16xf32, #tpu.memory_space<any>>, %arg2: memref<!tpu.dma_semaphore, #tpu.memory_space<semaphore_mem>>) attributes {dimension_semantics = [], scalar_prefetch = 0 : i64, scratch_operands = 1 : i64, tpu.core_type = #tpu.core_type<tc>} {
    tpu.enqueue_dma source(%arg0 : memref<2x4x16x16xf32, #tpu.memory_space<any>>) target(%arg1 : memref<2x4x16x16xf32, #tpu.memory_space<any>>) target_semaphore(%arg2 : memref<!tpu.dma_semaphore, #tpu.memory_space<semaphore_mem>>)
    tpu.wait_dma2 semaphore(%arg2 : memref<!tpu.dma_semaphore, #tpu.memory_space<semaphore_mem>>) src(%arg0 : memref<2x4x16x16xf32, #tpu.memory_space<any>>) dst(%arg1 : memref<2x4x16x16xf32, #tpu.memory_space<any>>)
    return
  }
}

</mosaic_0001>

<bundles_post_ra>
// kernel: tpu_custom_call.1
= control target key start
LH: loop header
LB: loop body
LE: loop exit
PB: predicated region body
PF: predicated region fallthrough
CT: control target
= control target key end

     0   :  { %s36_s6 = smov [#allocation2]   ;;  %s37_s7 = smov [#allocation3]   ;;  %s55_s0 = inlined_call_operand.hbm [shape: f32[2,4,16,16], index: 0, kind: input, shape index: {}]   ;;  %s56_s1 = inlined_call_operand.hbm [shape: f32[2,4,16,16], index: 1, kind: output, shape index: {}]  }
   0x1   :  { %s38_s8 = smov 0  }
   0x2   :  { %18 = dma.general %s55_s0, 2048, %s56_s1, %s36_s6, %s37_s7, [#allocation4], %s38_s8, 0  }
   0x3   :  { %34 = dma.done.wait [#allocation2], 2048 }
   0x4   :  { %35 = vsyncadd [#allocation2], 4294965248 }
   0x5   :  { %24 = vsyncmov [#allocation2] }
   0x8   :  { %s25_s13 = vpop.sfrf %24 }
   0x9   :  { %p30_p0 = scmp.ne.s32.totalorder %s25_s13, 0 }
   0xb   :  { %29 = shalt.err (%p30_p0)  }

</bundles_post_ra>
